<compile_context>
chip_gen: v7x
topology: tpu7x:2x2x1
jax: 0.10.0
libtpu: 0.0.40
codegen_flags: <defaults>
</compile_context>

<pallas_src>
import functools

import jax
import jax.numpy as jnp
import numpy as np
from jax import lax
from jax.experimental import pallas as pl
from jax.experimental.pallas import tpu as pltpu

BN_EPS = 1e-5
EXPANSION = 4
LANE = 128
_COMPUTE_DT = jnp.bfloat16       # MXU input dtype (f32 accumulation everywhere)


def _rup(x, m):
    return (x + m - 1) // m * m


def _pick_tile(dim, target):
    """Largest multiple of LANE <= target dividing dim (or dim when not 128-mult)."""
    if dim % LANE:
        return dim
    t = min(target, dim)
    t -= t % LANE
    if t <= 0:
        return dim
    while dim % t:
        t -= LANE
    return t


def _tile_rows(M, target, align=16):
    """Row tile (multiple of 16 so bf16 outputs tile cleanly) and padded M."""
    Mp = _rup(M, align)
    t = min(target, Mp)
    t -= t % align
    if t <= 0:
        t = Mp
    while Mp % t:
        t -= align
    return t, Mp


def _pick_th(Ho, Wo, target_m=256):
    """Output rows per conv grid step so the GEMM M dim is ~target_m."""
    th = max(1, min(Ho, max(1, target_m // max(Wo, 1))))
    while Ho % th:
        th -= 1
    return th


def _compiler_params(dim_sem, est_bytes=0):
    kw = dict(dimension_semantics=dim_sem)
    if est_bytes > 16 * 1024 * 1024:          # above v5e's scoped-VMEM default
        kw["vmem_limit_bytes"] = int(min(est_bytes * 5 // 4, 64 * 1024 * 1024))
    return pltpu.CompilerParams(**kw)


# ---------------------------------------------------------------------------
# Pallas kernels
# ---------------------------------------------------------------------------

def _gemm_bn_kernel(*refs, relu, has_res, has_proj, emit_preact):
    """Tiled GEMM + folded-BN epilogue (+ residual add / fused 1x1 projection)."""
    it = iter(refs)
    x_ref, w_ref, sb_ref = next(it), next(it), next(it)
    r_ref = next(it) if has_res else None
    if has_proj:
        xs_ref, wsc_ref, sbsc_ref = next(it), next(it), next(it)
    out_ref = next(it)
    pre_ref = next(it) if emit_preact else None
    acc_ref = next(it)

    k = pl.program_id(2)

    @pl.when(k == 0)
    def _():
        acc_ref[...] = jnp.zeros_like(acc_ref)

    # bf16 x bf16 -> f32 accumulation on the MXU (cast of f32 inputs is in-kernel).
    acc_ref[...] += jnp.dot(x_ref[...].astype(_COMPUTE_DT), w_ref[...],
                            preferred_element_type=jnp.float32)

    @pl.when(k == pl.num_programs(2) - 1)
    def _():
        sb = sb_ref[...]                                # (2, tn) f32
        y = acc_ref[...] * sb[0:1, :] + sb[1:2, :]      # folded BN
        if has_proj:                                    # fused 1x1 projection shortcut
            sbsc = sbsc_ref[...]
            r = jnp.dot(xs_ref[...].astype(_COMPUTE_DT), wsc_ref[...],
                        preferred_element_type=jnp.float32)
            y = y + (r * sbsc[0:1, :] + sbsc[1:2, :])
        if has_res:                                     # precomputed residual (any dtype)
            y = y + r_ref[...].astype(jnp.float32)
        if emit_preact:
            pre_ref[...] = y.astype(pre_ref.dtype)
        if relu:
            y = jnp.maximum(y, 0.0)
        out_ref[...] = y.astype(out_ref.dtype)


def _conv3x3_bn_kernel(x_ref, w_ref, sb_ref, o_ref, pad_ref, acc_ref,
                       *, stride, TH, Wo, H, W, relu):
    """3x3 conv (pad=1, any stride) + folded BN, TH output rows per grid step.

    x_ref:   (H, W, Cp)        unpadded bf16 frame (batch squeezed, resident)
    w_ref:   (9, Cp, Np)       per-tap GEMM weights (resident)
    sb_ref:  (2, Np)           folded BN scale / bias
    o_ref:   (TH*Wo, Np)       flat output rows for this (n, h) tile
    pad_ref: (H+2, W+2, Cp) f32  in-VMEM spatially padded window (built once/frame)
    acc_ref: (TH*Wo, Np) f32   accumulator
    """
    h_tile = pl.program_id(1)
    Cp = x_ref.shape[-1]

    @pl.when(h_tile == 0)
    def _build_window():
        pad_ref[...] = jnp.zeros(pad_ref.shape, pad_ref.dtype)

        def body(i, carry):
            pad_ref[i + 1, pl.ds(1, W), :] = x_ref[i].astype(pad_ref.dtype)
            return carry

        lax.fori_loop(0, H, body, None)

    h0 = h_tile * TH
    first = True
    for ky in range(3):
        for kx in range(3):
            if stride == 1:
                lhs = pad_ref[pl.ds(h0 + ky, TH), pl.ds(kx, Wo), :]
                lhs = lhs.reshape(TH * Wo, Cp)
            else:
                # Column stride via strided ref read; rows via scalar indices.
                rows = [pad_ref[(h0 + i) * stride + ky,
                                pl.ds(kx, Wo, stride=stride), :]
                        for i in range(TH)]
                lhs = rows[0] if TH == 1 else jnp.concatenate(rows, axis=0)
            part = jnp.dot(lhs.astype(_COMPUTE_DT), w_ref[ky * 3 + kx],
                           preferred_element_type=jnp.float32)
            if first:
                acc_ref[...] = part
                first = False
            else:
                acc_ref[...] += part

    sb = sb_ref[...]
    y = acc_ref[...] * sb[0:1, :] + sb[1:2, :]
    if relu:
        y = jnp.maximum(y, 0.0)
    o_ref[...] = y.astype(o_ref.dtype)


def _proj1x1_bn_kernel(x_ref, w_ref, sb_ref, o_ref, *, stride, TH, Wo):
    """Strided 1x1 projection shortcut + folded BN (stride handled in-kernel)."""
    h0 = pl.program_id(1) * TH
    Cin = x_ref.shape[-1]
    if stride == 1:
        lhs = x_ref[pl.ds(h0, TH), pl.ds(0, Wo), :].reshape(TH * Wo, Cin)
    else:
        rows = [x_ref[(h0 + i) * stride, pl.ds(0, Wo, stride=stride), :]
                for i in range(TH)]
        lhs = rows[0] if TH == 1 else jnp.concatenate(rows, axis=0)
    y = jnp.dot(lhs.astype(_COMPUTE_DT), w_ref[...],
                preferred_element_type=jnp.float32)
    sb = sb_ref[...]
    y = y * sb[0:1, :] + sb[1:2, :]
    o_ref[...] = y.astype(o_ref.dtype)


# ---------------------------------------------------------------------------
# Pallas wrappers
# ---------------------------------------------------------------------------

def gemm_bn(x, w, sb, *, relu, residual=None, proj=None, emit_preact=False,
            out_dtype, tm_target=512, tn_target=2048, tk_target=512):
    """maybe_relu(bn(x @ w) [+ bn_sc(xs @ w_sc)] [+ residual]) as a tiled GEMM."""
    M, K = x.shape
    Kw, N = w.shape
    assert Kw == K and sb.shape == (2, N)

    tn = _pick_tile(N, tn_target)              # tn == N whenever it fits the target
    tk = K if (K % LANE) else _pick_tile(K, tk_target)
    tm, Mp = _tile_rows(M, tm_target)

    def pad_rows(a):
        return a if a.shape[0] == Mp else jnp.pad(a, ((0, Mp - a.shape[0]), (0, 0)))

    x = pad_rows(x)
    in_specs = [pl.BlockSpec((tm, tk), lambda i, j, k: (i, k)),
                pl.BlockSpec((tk, tn), lambda i, j, k: (k, j)),
                pl.BlockSpec((2, tn), lambda i, j, k: (0, j))]
    args = [x, w, sb]
    est = 2 * (tm * tk * x.dtype.itemsize + tk * tn * 2 + 2 * tn * 4)

    if residual is not None:
        residual = pad_rows(residual)
        in_specs.append(pl.BlockSpec((tm, tn), lambda i, j, k: (i, j)))
        args.append(residual)
        est += 2 * tm * tn * residual.dtype.itemsize
    if proj is not None:
        xs, wsc, sbsc = proj
        xs = pad_rows(xs)
        Ks = xs.shape[1]
        in_specs += [pl.BlockSpec((tm, Ks), lambda i, j, k: (i, 0)),
                     pl.BlockSpec((Ks, tn), lambda i, j, k: (0, j)),
                     pl.BlockSpec((2, tn), lambda i, j, k: (0, j))]
        args += [xs, wsc, sbsc]
        est += 2 * (tm * Ks * xs.dtype.itemsize + Ks * tn * 2 + 2 * tn * 4)

    odt = jnp.dtype(out_dtype)
    est += 2 * (2 if emit_preact else 1) * tm * tn * odt.itemsize + tm * tn * 4

    out_spec = pl.BlockSpec((tm, tn), lambda i, j, k: (i, j))
    if emit_preact:
        out_shape = (jax.ShapeDtypeStruct((Mp, N), out_dtype),
                     jax.ShapeDtypeStruct((Mp, N), out_dtype))
        out_specs = (out_spec, out_spec)
    else:
        out_shape = jax.ShapeDtypeStruct((Mp, N), out_dtype)
        out_specs = out_spec

    res = pl.pallas_call(
        functools.partial(_gemm_bn_kernel, relu=relu,
                          has_res=residual is not None,
                          has_proj=proj is not None,
                          emit_preact=emit_preact),
        out_shape=out_shape,
        grid=(Mp // tm, N // tn, K // tk),
        in_specs=in_specs,
        out_specs=out_specs,
        scratch_shapes=[pltpu.VMEM((tm, tn), jnp.float32)],
        compiler_params=_compiler_params(("parallel", "parallel", "arbitrary"), est),
    )(*args)

    if emit_preact:
        out, pre = res
        return (out[:M], pre[:M]) if Mp != M else (out, pre)
    return res[:M] if Mp != M else res


def conv3x3_bn(x, w_taps, sb, *, stride, out_dtype):
    """3x3 conv (pad=1, stride) + folded BN + ReLU; output flattened to (M, Np)."""
    NB, H, W, Cp = x.shape
    KK, Cw, Np = w_taps.shape
    assert KK == 9 and Cw == Cp
    Ho = (H - 1) // stride + 1
    Wo = (W - 1) // stride + 1
    TH = _pick_th(Ho, Wo)
    nH = Ho // TH
    odt = jnp.dtype(out_dtype)

    est = (2 * H * W * Cp * x.dtype.itemsize            # frame (double buffered)
           + (H + 2) * (W + 2) * Cp * 4                 # padded window scratch
           + 2 * (KK * Cp * Np * 2 + 2 * Np * 4)        # weights + scale/bias
           + TH * Wo * Np * 4                           # accumulator
           + 2 * TH * Wo * Np * odt.itemsize)           # output

    return pl.pallas_call(
        functools.partial(_conv3x3_bn_kernel, stride=stride, TH=TH, Wo=Wo,
                          H=H, W=W, relu=True),
        out_shape=jax.ShapeDtypeStruct((NB * Ho * Wo, Np), out_dtype),
        grid=(NB, nH),
        in_specs=[
            # TODO(synk): for very large feature maps tile H with a halo instead of
            # keeping the whole frame resident (v7x has only 64 MiB physical VMEM).
            pl.BlockSpec((None, H, W, Cp), lambda n, h: (n, 0, 0, 0)),
            pl.BlockSpec((KK, Cp, Np), lambda n, h: (0, 0, 0)),
            pl.BlockSpec((2, Np), lambda n, h: (0, 0)),
        ],
        out_specs=pl.BlockSpec((TH * Wo, Np), lambda n, h: (n * nH + h, 0)),
        scratch_shapes=[pltpu.VMEM((H + 2, W + 2, Cp), jnp.float32),
                        pltpu.VMEM((TH * Wo, Np), jnp.float32)],
        compiler_params=_compiler_params(("parallel", "arbitrary"), est),
    )(x, w_taps, sb)


def proj1x1_bn(x, w, sb, *, stride, out_dtype):
    """Strided 1x1 projection + folded BN; x[:, ::s, ::s, :] never hits HBM."""
    NB, H, W, Cin = x.shape
    Kw, Np = w.shape
    assert Kw == Cin
    Ho = (H - 1) // stride + 1
    Wo = (W - 1) // stride + 1
    TH = _pick_th(Ho, Wo)
    nH = Ho // TH

    return pl.pallas_call(
        functools.partial(_proj1x1_bn_kernel, stride=stride, TH=TH, Wo=Wo),
        out_shape=jax.ShapeDtypeStruct((NB * Ho * Wo, Np), out_dtype),
        grid=(NB, nH),
        in_specs=[
            pl.BlockSpec((None, H, W, Cin), lambda n, h: (n, 0, 0, 0)),
            pl.BlockSpec((Cin, Np), lambda n, h: (0, 0)),
            pl.BlockSpec((2, Np), lambda n, h: (0, 0)),
        ],
        out_specs=pl.BlockSpec((TH * Wo, Np), lambda n, h: (n * nH + h, 0)),
        compiler_params=_compiler_params(("parallel", "parallel")),
    )(x, w, sb)


# ---------------------------------------------------------------------------
# Parameter preparation (hoisted out of the per-forward path)
# ---------------------------------------------------------------------------

def _fold_bn(gamma, beta, mean, var, n_pad):
    scale = gamma / jnp.sqrt(var + BN_EPS)
    bias = beta - mean * scale
    sb = jnp.stack([scale, bias]).astype(jnp.float32)          # (2, C)
    return jnp.pad(sb, ((0, 0), (0, n_pad - sb.shape[1])))     # zero-padded lanes


def prepare_params(params, *, stride):
    planes, cin = params["w1"].shape[:2]
    cout = EXPANSION * planes
    planesp, coutp = _rup(planes, LANE), _rup(cout, LANE)

    def w1x1(w, n_pad):                      # (O, K, 1, 1) -> (K, Np) bf16, K unpadded
        w2d = jnp.transpose(w[:, :, 0, 0], (1, 0))
        return jnp.pad(w2d, ((0, 0), (0, n_pad - w2d.shape[1]))).astype(_COMPUTE_DT)

    # (O, I, 3, 3) -> (ky, kx, I, O) -> (9, I, O), zero-padded channels, bf16
    w2 = jnp.transpose(params["w2"], (2, 3, 1, 0)).reshape(9, planes, planes)
    w2 = jnp.pad(w2, ((0, 0), (0, planesp - planes),
                      (0, planesp - planes))).astype(_COMPUTE_DT)
    w3 = jnp.transpose(params["w3"][:, :, 0, 0], (1, 0))
    w3 = jnp.pad(w3, ((0, planesp - planes),
                      (0, coutp - cout))).astype(_COMPUTE_DT)

    prep = {
        "cin": cin, "planes": planes, "cout": cout,
        "planesp": planesp, "coutp": coutp, "stride": stride,
        "has_proj": (stride != 1 or cin != cout),
        "w1": w1x1(params["w1"], planesp), "sb1": _fold_bn(*params["bn1"], planesp),
        "w2": w2, "sb2": _fold_bn(*params["bn2"], planesp),
        "w3": w3, "sb3": _fold_bn(*params["bn3"], coutp),
    }
    if prep["has_proj"]:
        prep["w_sc"] = w1x1(params["w_sc"], coutp)
        prep["sb_sc"] = _fold_bn(*params["bn_sc"], coutp)
    return prep


# ---------------------------------------------------------------------------
# Bottleneck forward
# ---------------------------------------------------------------------------

def bottleneck_forward(x_nchw, prep, *, is_last):
    stride = prep["stride"]
    planesp, cout, coutp = prep["planesp"], prep["cout"], prep["coutp"]

    # Single boundary transpose to NHWC; no channel-pad / cast passes over x.
    x = jnp.transpose(x_nchw, (0, 2, 3, 1))
    NB, H, W, cin = x.shape
    assert cin == prep["cin"]
    Ho = (H - 1) // stride + 1
    Wo = (W - 1) // stride + 1
    M1, M3 = NB * H * W, NB * Ho * Wo

    # conv1 (1x1) + bn1 + relu : f32 x consumed unpadded, cast to bf16 in-kernel.
    out1 = gemm_bn(x.reshape(M1, cin), prep["w1"], prep["sb1"],
                   relu=True, out_dtype=jnp.bfloat16)
    out1 = out1.reshape(NB, H, W, planesp)

    # conv2 (3x3, stride, pad=1) + bn2 + relu : in-kernel spatial pad, TH rows/GEMM.
    out2 = conv3x3_bn(out1, prep["w2"], prep["sb2"], stride=stride,
                      out_dtype=jnp.bfloat16)                  # (M3, planesp)

    # shortcut
    residual, proj = None, None
    if not prep["has_proj"]:
        assert stride == 1 and cin == cout, "identity shortcut requires stride=1, cin==cout"
        if cout == coutp:
            residual = x.reshape(M3, cout)                     # identity, zero-copy
        else:
            residual = jnp.pad(x, ((0, 0),) * 3 + ((0, coutp - cout),)
                               ).astype(jnp.bfloat16).reshape(M3, coutp)
    elif stride == 1:
        # 1x1 projection fused into the conv3 epilogue (residual never hits HBM).
        proj = (x.reshape(M3, cin), prep["w_sc"], prep["sb_sc"])
    else:
        # strided 1x1 projection, stride handled in-kernel, bf16 residual.
        residual = proj1x1_bn(x, prep["w_sc"], prep["sb_sc"], stride=stride,
                              out_dtype=jnp.bfloat16)          # (M3, coutp)

    # conv3 (1x1) + bn3 + shortcut add + relu (fused); preact only when is_last.
    res3 = gemm_bn(out2, prep["w3"], prep["sb3"], relu=True,
                   residual=residual, proj=proj, emit_preact=is_last,
                   out_dtype=x.dtype)

    def to_nchw(flat):
        y = flat.reshape(NB, Ho, Wo, coutp)[..., :cout]
        return jnp.transpose(y, (0, 3, 1, 2))

    if is_last:
        out, pre = res3
        return to_nchw(out), to_nchw(pre)
    return to_nchw(res3)


# ---------------------------------------------------------------------------
# Pure-JAX reference (mirrors the PyTorch forward in eval mode, f32 HIGHEST)
# ---------------------------------------------------------------------------

def _conv_ref(x, w, stride=1, padding=0):
    return jax.lax.conv_general_dilated(
        x, w, (stride, stride), [(padding, padding)] * 2,
        dimension_numbers=("NCHW", "OIHW", "NCHW"),
        precision=jax.lax.Precision.HIGHEST)


def _bn_ref(x, gamma, beta, mean, var):
    inv = gamma / jnp.sqrt(var + BN_EPS)
    return x * inv[None, :, None, None] + (beta - mean * inv)[None, :, None, None]


def bottleneck_ref(x, p, *, stride, is_last):
    out = jax.nn.relu(_bn_ref(_conv_ref(x, p["w1"]), *p["bn1"]))
    out = jax.nn.relu(_bn_ref(_conv_ref(out, p["w2"], stride, 1), *p["bn2"]))
    out = _bn_ref(_conv_ref(out, p["w3"]), *p["bn3"])
    cin, cout = x.shape[1], p["w3"].shape[0]
    if stride != 1 or cin != cout:
        sc = _bn_ref(_conv_ref(x, p["w_sc"], stride), *p["bn_sc"])
    else:
        sc = x
    out = out + sc
    preact = out
    out = jax.nn.relu(out)
    return (out, preact) if is_last else out


# ---------------------------------------------------------------------------
# Main
# ---------------------------------------------------------------------------

if __name__ == "__main__":
    def bn_params(k, c):
        k1, k2, k3, k4 = jax.random.split(k, 4)
        gamma = 1.0 + 0.1 * jax.random.normal(k1, (c,), jnp.float32)
        beta = 0.1 * jax.random.normal(k2, (c,), jnp.float32)
        mean = 0.05 * jax.random.normal(k3, (c,), jnp.float32)
        var = 0.5 + 0.5 * jnp.abs(jax.random.normal(k4, (c,), jnp.float32))
        return (gamma, beta, mean, var)

    def make_params(key, in_planes, planes, with_proj):
        cout = EXPANSION * planes
        ks = jax.random.split(key, 8)
        p = {
            "w1": 0.2 * jax.random.normal(ks[0], (planes, in_planes, 1, 1), jnp.float32),
            "bn1": bn_params(ks[1], planes),
            "w2": 0.2 * jax.random.normal(ks[2], (planes, planes, 3, 3), jnp.float32),
            "bn2": bn_params(ks[3], planes),
            "w3": 0.2 * jax.random.normal(ks[4], (cout, planes, 1, 1), jnp.float32),
            "bn3": bn_params(ks[5], cout),
        }
        if with_proj:
            p["w_sc"] = 0.2 * jax.random.normal(ks[6], (cout, in_planes, 1, 1), jnp.float32)
            p["bn_sc"] = bn_params(ks[7], cout)
        return p

    # bf16 matmuls (f32 accumulation) vs f32 HIGHEST reference -> loosened tolerance.
    RTOL = ATOL = 5e-2

    key = jax.random.PRNGKey(0)
    kA, kB, kxA, kxB = jax.random.split(key, 4)

    # Config A: projection shortcut (stride=2), is_last=True -> (out, preact)
    in_planes, planes, stride = 4, 4, 2
    pA = make_params(kA, in_planes, planes, with_proj=True)
    prepA = prepare_params(pA, stride=stride)
    xA = jax.random.normal(kxA, (2, in_planes, 16, 16), jnp.float32)
    outA, preA = jax.block_until_ready(
        bottleneck_forward(xA, prepA, is_last=True))
    outA_r, preA_r = bottleneck_ref(xA, pA, stride=stride, is_last=True)
    np.testing.assert_allclose(np.asarray(outA), np.asarray(outA_r),
                               rtol=RTOL, atol=ATOL)
    np.testing.assert_allclose(np.asarray(preA), np.asarray(preA_r),
                               rtol=RTOL, atol=ATOL)

    # Config B: identity shortcut (stride=1, in_planes == 4*planes), is_last=False
    in_planes, planes, stride = 16, 4, 1
    pB = make_params(kB, in_planes, planes, with_proj=False)
    prepB = prepare_params(pB, stride=stride)
    xB = jax.random.normal(kxB, (2, in_planes, 16, 16), jnp.float32)
    outB = jax.block_until_ready(bottleneck_forward(xB, prepB, is_last=False))
    outB_r = bottleneck_ref(xB, pB, stride=stride, is_last=False)
    np.testing.assert_allclose(np.asarray(outB), np.asarray(outB_r),
                               rtol=RTOL, atol=ATOL)

    print("KERNEL_OK")
</pallas_src>

<mosaic_0001>
module attributes {stable_mosaic.version = 11 : i64} {
  func.func @_gemm_bn_kernel(%arg0: i32, %arg1: i32, %arg2: i32, %arg3: memref<512x4xf32, #tpu.memory_space<vmem>>, %arg4: memref<4x128xbf16, #tpu.memory_space<vmem>>, %arg5: memref<2x128xf32, #tpu.memory_space<vmem>>, %arg6: memref<512x128xbf16, #tpu.memory_space<vmem>>, %arg7: memref<512x128xf32, #tpu.memory_space<vmem>>) attributes {dimension_semantics = [#tpu.dimension_semantics<parallel>, #tpu.dimension_semantics<parallel>, #tpu.dimension_semantics<arbitrary>], iteration_bounds = array<i64: 1, 1, 1>, scalar_prefetch = 0 : i64, scratch_operands = 1 : i64, tpu.core_type = #tpu.core_type<tc>, window_params = [{transform_indices = @transform_0, window_bounds = array<i64: 512, 4>}, {transform_indices = @transform_1, window_bounds = array<i64: 4, 128>}, {transform_indices = @transform_2, window_bounds = array<i64: 2, 128>}, {transform_indices = @transform_3, window_bounds = array<i64: 512, 128>}]} {
    %c0_i32 = arith.constant 0 : i32
    %0 = arith.cmpi eq, %arg2, %c0_i32 : i32
    %1 = arith.extui %0 : i1 to i32
    %c0_i32_0 = arith.constant 0 : i32
    %2 = arith.cmpi ne, %1, %c0_i32_0 : i32
    scf.if %2 {
      %cst_10 = arith.constant 0.000000e+00 : f32
      %13 = vector.broadcast %cst_10 : f32 to vector<512x128xf32>
      %c0_11 = arith.constant 0 : index
      %c0_12 = arith.constant 0 : index
      %14 = vector.load %arg7[%c0_11, %c0_12] : memref<512x128xf32, #tpu.memory_space<vmem>>, vector<512x128xf32>
      tpu.vector_store %arg7[%c0_11, %c0_12], %13 {strides = array<i32>} : memref<512x128xf32, #tpu.memory_space<vmem>>, vector<512x128xf32>,
    } else {
    }
    %c0 = arith.constant 0 : index
    %c0_1 = arith.constant 0 : index
    %3 = vector.load %arg7[%c0, %c0_1] : memref<512x128xf32, #tpu.memory_space<vmem>>, vector<512x128xf32>
    %c0_2 = arith.constant 0 : index
    %c0_3 = arith.constant 0 : index
    %4 = vector.load %arg3[%c0_2, %c0_3] : memref<512x4xf32, #tpu.memory_space<vmem>>, vector<512x4xf32>
    %5 = arith.truncf %4 : vector<512x4xf32> to vector<512x4xbf16>
    %c0_4 = arith.constant 0 : index
    %c0_5 = arith.constant 0 : index
    %6 = vector.load %arg4[%c0_4, %c0_5] : memref<4x128xbf16, #tpu.memory_space<vmem>>, vector<4x128xbf16>
    %cst = arith.constant dense<0.000000e+00> : vector<512x128xf32>
    %7 = tpu.matmul %5, %6, %cst {dimension_numbers = #tpu.dot_dimension_numbers<[1], [0], [0], [1], [0, 0, 1, 1], [], []>} : vector<512x4xbf16>, vector<4x128xbf16>, vector<512x128xf32> -> vector<512x128xf32>
    %8 = arith.addf %3, %7 : vector<512x128xf32>
    %c0_6 = arith.constant 0 : index
    %c0_7 = arith.constant 0 : index
    %9 = vector.load %arg7[%c0_6, %c0_7] : memref<512x128xf32, #tpu.memory_space<vmem>>, vector<512x128xf32>
    tpu.vector_store %arg7[%c0_6, %c0_7], %8 {strides = array<i32>} : memref<512x128xf32, #tpu.memory_space<vmem>>, vector<512x128xf32>,
    %c0_i32_8 = arith.constant 0 : i32
    %10 = arith.cmpi eq, %arg2, %c0_i32_8 : i32
    %11 = arith.extui %10 : i1 to i32
    %c0_i32_9 = arith.constant 0 : i32
    %12 = arith.cmpi ne, %11, %c0_i32_9 : i32
    scf.if %12 {
      %c0_10 = arith.constant 0 : index
      %c0_11 = arith.constant 0 : index
      %13 = vector.load %arg5[%c0_10, %c0_11] : memref<2x128xf32, #tpu.memory_space<vmem>>, vector<2x128xf32>
      %c0_12 = arith.constant 0 : index
      %c0_13 = arith.constant 0 : index
      %14 = vector.load %arg7[%c0_12, %c0_13] : memref<512x128xf32, #tpu.memory_space<vmem>>, vector<512x128xf32>
      %15 = vector.extract_strided_slice %13 {offsets = [0, 0], sizes = [1, 128], strides = [1, 1]} : vector<2x128xf32> to vector<1x128xf32>
      %16 = vector.broadcast %15 : vector<1x128xf32> to vector<512x128xf32>
      %17 = arith.mulf %14, %16 : vector<512x128xf32>
      %18 = vector.extract_strided_slice %13 {offsets = [1, 0], sizes = [1, 128], strides = [1, 1]} : vector<2x128xf32> to vector<1x128xf32>
      %19 = vector.broadcast %18 : vector<1x128xf32> to vector<512x128xf32>
      %20 = arith.addf %17, %19 : vector<512x128xf32>
      %cst_14 = arith.constant 0.000000e+00 : f32
      %21 = vector.broadcast %cst_14 : f32 to vector<512x128xf32>
      %22 = arith.maximumf %20, %21 : vector<512x128xf32>
      %23 = arith.truncf %22 : vector<512x128xf32> to vector<512x128xbf16>
      %c0_15 = arith.constant 0 : index
      %c0_16 = arith.constant 0 : index
      %24 = vector.load %arg6[%c0_15, %c0_16] : memref<512x128xbf16, #tpu.memory_space<vmem>>, vector<512x128xbf16>
      tpu.vector_store %arg6[%c0_15, %c0_16], %23 {strides = array<i32>} : memref<512x128xbf16, #tpu.memory_space<vmem>>, vector<512x128xbf16>,
    } else {
    }
    return
  }
  func.func @transform_0(%arg0: i32, %arg1: i32, %arg2: i32) -> (i32, i32) {
    %c0_i32 = arith.constant 0 : i32
    return %arg0, %arg2 : i32, i32
  }
  func.func @transform_1(%arg0: i32, %arg1: i32, %arg2: i32) -> (i32, i32) {
    %c0_i32 = arith.constant 0 : i32
    return %arg2, %arg1 : i32, i32
  }
  func.func @transform_2(%arg0: i32, %arg1: i32, %arg2: i32) -> (i32, i32) {
    %c0_i32 = arith.constant 0 : i32
    %c0_i32_0 = arith.constant 0 : i32
    return %c0_i32, %arg1 : i32, i32
  }
  func.func @transform_3(%arg0: i32, %arg1: i32, %arg2: i32) -> (i32, i32) {
    %c0_i32 = arith.constant 0 : i32
    return %arg0, %arg1 : i32, i32
  }
}

</mosaic_0001>

<bundles_post_ra>
// kernel: tpu_custom_call.1
= control target key start
LH: loop header
LB: loop body
LE: loop exit
PB: predicated region body
PF: predicated region fallthrough
CT: control target
= control target key end

     0   :  { %vm342_vm0 = vcmask 1041408   ;;  %vm245_vm1 = vcmask 31744   ;;  %s2245_s0 = inlined_call_operand.vmem [shape: f32[512,4], index: 0, kind: input, shape index: {}]   ;;  %s2246_s1 = inlined_call_operand.vmem [shape: bf16[4,128], index: 1, kind: input, shape index: {}]   ;;  %s2247_s2 = inlined_call_operand.vmem [shape: f32[2,128], index: 2, kind: input, shape index: {}]   ;;  %s2248_s3 = inlined_call_operand.hbm [shape: bf16[512,128], index: 3, kind: output, shape index: {}]  }
   0x1   :  { %v244_v0 = vld [vmem:[%s2246_s1] sm:$0x3]  ;;  %v149_v2 = vld [vmem:[%s2245_s0 + $0x8] sm:$0xff]  ;;  %v150_v7 = vld [vmem:[%s2245_s0 + $0x10] sm:$0xff] }
   0x2   :  { %v148_v1 = vld [vmem:[%s2245_s0] sm:$0xff]  ;;  %1819 = vmatprep.subr.msk.bf16.mxu0 %vm342_vm0, %v244_v0  ;;  %1820 = vmatprep.subr.msk.bf16.mxu1 %vm342_vm0, %v244_v0  ;;  %v344_v3 = vsel %vm342_vm0, %v244_v0, 0  ;;  %v181_v6 = vld [vmem:[%s2245_s0 + $0x108] sm:$0xff]  ;;  %v151_v9 = vld [vmem:[%s2245_s0 + $0x18] sm:$0xff] }
   0x3   :  { %v212_v4 = vpack.c.bf16 %v149_v2, %v148_v1  ;;  %v180_v5 = vld [vmem:[%s2245_s0 + $0x100] sm:$0xff]  ;;  %1752 = vmatpush3.bf16.msra.mxu0 %v344_v3  ;;  %1818 = vmatpush3.bf16.msra.mxu1 %v344_v3  ;;  %v182_v10 = vld [vmem:[%s2245_s0 + $0x110] sm:$0xff]  ;;  %v183_v11 = vld [vmem:[%s2245_s0 + $0x118] sm:$0xff]  ;;  %v213_v12 = vpack.c.bf16 %v151_v9, %v150_v7 }
   0x4   :  { %v228_v8 = vpack.c.bf16 %v181_v6, %v180_v5  ;;  %v229_v13 = vpack.c.bf16 %v183_v11, %v182_v10  ;;  %v152_v14 = vld [vmem:[%s2245_s0 + $0x20] sm:$0xff]  ;;  %v153_v15 = vld [vmem:[%s2245_s0 + $0x28] sm:$0xff]  ;;  %v154_v20 = vld [vmem:[%s2245_s0 + $0x30] sm:$0xff] }
   0x5   :  { %1753 = vmatprep.mubr.msk.bf16.mxu0 %vm245_vm1, %v212_v4  ;;  %v184_v16 = vld [vmem:[%s2245_s0 + $0x120] sm:$0xff]  ;;  %v214_v17 = vpack.c.bf16 %v153_v15, %v152_v14  ;;  %v185_v18 = vld [vmem:[%s2245_s0 + $0x128] sm:$0xff]  ;;  %v155_v21 = vld [vmem:[%s2245_s0 + $0x38] sm:$0xff] }
   0x6   :  { %1785 = vmatprep.mubr.msk.bf16.mxu1 %vm245_vm1, %v228_v8  ;;  %1754 = vmatmul.mubr.msk.bf16.vlgmr.msra.gmra.mrb[0].mxu0 %vm245_vm1, %v213_v12  ;;  %v230_v19 = vpack.c.bf16 %v185_v18, %v184_v16  ;;  %v186_v22 = vld [vmem:[%s2245_s0 + $0x130] sm:$0xff]  ;;  %v187_v23 = vld [vmem:[%s2245_s0 + $0x138] sm:$0xff]  ;;  %v156_v24 = vld [vmem:[%s2245_s0 + $0x40] sm:$0xff]  ;;  %v215_v28 = vpack.c.bf16 %v155_v21, %v154_v20 }
   0x7   :  { %1786 = vmatmul.mubr.msk.bf16.vlgmr.msra.gmra.mrb[0].mxu1 %vm245_vm1, %v229_v13  ;;  %1757 = vmatprep.mubr.msk.bf16.mxu0 %vm245_vm1, %v214_v17  ;;  %v157_v25 = vld [vmem:[%s2245_s0 + $0x48] sm:$0xff]  ;;  %v188_v26 = vld [vmem:[%s2245_s0 + $0x140] sm:$0xff]  ;;  %v231_v29 = vpack.c.bf16 %v187_v23, %v186_v22  ;;  %v158_v32 = vld [vmem:[%s2245_s0 + $0x50] sm:$0xff] }
   0x8   :  { %1789 = vmatprep.mubr.msk.bf16.mxu1 %vm245_vm1, %v230_v19  ;;  %v189_v27 = vld [vmem:[%s2245_s0 + $0x148] sm:$0xff]  ;;  %v216_v30 = vpack.c.bf16 %v157_v25, %v156_v24  ;;  %v159_v33 = vld [vmem:[%s2245_s0 + $0x58] sm:$0xff]  ;;  %v190_v34 = vld [vmem:[%s2245_s0 + $0x150] sm:$0xff] }
   0x9   :  { %v232_v31 = vpack.c.bf16 %v189_v27, %v188_v26  ;;  %v191_v35 = vld [vmem:[%s2245_s0 + $0x158] sm:$0xff]  ;;  %v160_v36 = vld [vmem:[%s2245_s0 + $0x60] sm:$0xff]  ;;  %v161_v37 = vld [vmem:[%s2245_s0 + $0x68] sm:$0xff]  ;;  %v217_v40 = vpack.c.bf16 %v159_v33, %v158_v32 }
   0xa   :  { %v192_v38 = vld [vmem:[%s2245_s0 + $0x160] sm:$0xff]  ;;  %v193_v39 = vld [vmem:[%s2245_s0 + $0x168] sm:$0xff]  ;;  %v233_v41 = vpack.c.bf16 %v191_v35, %v190_v34  ;;  %v218_v42 = vpack.c.bf16 %v161_v37, %v160_v36  ;;  %v162_v44 = vld [vmem:[%s2245_s0 + $0x70] sm:$0xff] }
   0xb   :  { %v234_v43 = vpack.c.bf16 %v193_v39, %v192_v38  ;;  %v163_v45 = vld [vmem:[%s2245_s0 + $0x78] sm:$0xff] }
   0xe   :  { %1758 = vmatmul.mubr.msk.bf16.gmra.mrb[4].mxu0 %vm245_vm1, %v215_v28 }
   0xf   :  { %1790 = vmatmul.mubr.msk.bf16.gmra.mrb[4].mxu1 %vm245_vm1, %v231_v29  ;;  %1761 = vmatprep.mubr.msk.bf16.mxu0 %vm245_vm1, %v216_v30 }
  0x10   :  { %1793 = vmatprep.mubr.msk.bf16.mxu1 %vm245_vm1, %v232_v31 }
  0x16   :  { %1762 = vmatmul.mubr.msk.bf16.gmra.mrb[8].mxu0 %vm245_vm1, %v217_v40 }
  0x17   :  { %1794 = vmatmul.mubr.msk.bf16.gmra.mrb[8].mxu1 %vm245_vm1, %v233_v41 }
  0x18   :  { %8 = vsyncpa [#allocation4], 0  ;;  %1765 = vmatprep.mubr.msk.bf16.mxu0 %vm245_vm1, %v218_v42  ;;  %1797 = vmatprep.mubr.msk.bf16.mxu1 %vm245_vm1, %v234_v43  ;;  %v194_v46 = vld [vmem:[%s2245_s0 + $0x170] sm:$0xff]  ;;  %v195_v47 = vld [vmem:[%s2245_s0 + $0x178] sm:$0xff]  ;;  %v219_v52 = vpack.c.bf16 %v163_v45, %v162_v44  ;;  %v831_v34 = vlaneseq }
  0x19   :  { %v164_v48 = vld [vmem:[%s2245_s0 + $0x80] sm:$0xff]  ;;  %v165_v49 = vld [vmem:[%s2245_s0 + $0x88] sm:$0xff]  ;;  %v235_v53 = vpack.c.bf16 %v195_v47, %v194_v46  ;;  %v166_v56 = vld [vmem:[%s2245_s0 + $0x90] sm:$0xff] }
  0x1a   :  { %v196_v50 = vld [vmem:[%s2245_s0 + $0x180] sm:$0xff]  ;;  %v197_v51 = vld [vmem:[%s2245_s0 + $0x188] sm:$0xff]  ;;  %v220_v54 = vpack.c.bf16 %v165_v49, %v164_v48  ;;  %v167_v57 = vld [vmem:[%s2245_s0 + $0x98] sm:$0xff]  ;;  %v832_v35 = vshrl.u32 %v831_v34, 7 }
  0x1b   :  { %v236_v55 = vpack.c.bf16 %v197_v51, %v196_v50  ;;  %v198_v58 = vld [vmem:[%s2245_s0 + $0x190] sm:$0xff]  ;;  %v199_v59 = vld [vmem:[%s2245_s0 + $0x198] sm:$0xff]  ;;  %v168_v60 = vld [vmem:[%s2245_s0 + $0xa0] sm:$0xff]  ;;  %v221_v0 = vpack.c.bf16 %v167_v57, %v166_v56 }
  0x1c   :  { %v169_v61 = vld [vmem:[%s2245_s0 + $0xa8] sm:$0xff]  ;;  %v200_v62 = vld [vmem:[%s2245_s0 + $0x1a0] sm:$0xff]  ;;  %v237_v1 = vpack.c.bf16 %v199_v59, %v198_v58  ;;  %v170_v4 = vld [vmem:[%s2245_s0 + $0xb0] sm:$0xff]  ;;  %v833_v36 = vsub.s32 0, %v832_v35  ;;  %v901_v38 = vsub.s32 1, %v832_v35 }
  0x1d   :  { %v201_v63 = vld [vmem:[%s2245_s0 + $0x1a8] sm:$0xff]  ;;  %v222_v2 = vpack.c.bf16 %v169_v61, %v168_v60  ;;  %v171_v5 = vld [vmem:[%s2245_s0 + $0xb8] sm:$0xff]  ;;  %v202_v6 = vld [vmem:[%s2245_s0 + $0x1b0] sm:$0xff] }
  0x1e   :  { %1766 = vmatmul.mubr.msk.bf16.gmra.mrb[12].mxu0 %vm245_vm1, %v219_v52  ;;  %v238_v3 = vpack.c.bf16 %v201_v63, %v200_v62  ;;  %v203_v7 = vld [vmem:[%s2245_s0 + $0x1b8] sm:$0xff]  ;;  %v172_v8 = vld [vmem:[%s2245_s0 + $0xc0] sm:$0xff]  ;;  %v173_v9 = vld [vmem:[%s2245_s0 + $0xc8] sm:$0xff]  ;;  %v223_v12 = vpack.c.bf16 %v171_v5, %v170_v4 }
  0x1f   :  { %1798 = vmatmul.mubr.msk.bf16.gmra.mrb[12].mxu1 %vm245_vm1, %v235_v53  ;;  %1769 = vmatprep.mubr.msk.bf16.mxu0 %vm245_vm1, %v220_v54  ;;  %v204_v10 = vld [vmem:[%s2245_s0 + $0x1c0] sm:$0xff]  ;;  %v205_v11 = vld [vmem:[%s2245_s0 + $0x1c8] sm:$0xff]  ;;  %v239_v13 = vpack.c.bf16 %v203_v7, %v202_v6  ;;  %v224_v14 = vpack.c.bf16 %v173_v9, %v172_v8  ;;  %v174_v16 = vld [vmem:[%s2245_s0 + $0xd0] sm:$0xff] }
  0x20   :  { %1801 = vmatprep.mubr.msk.bf16.mxu1 %vm245_vm1, %v236_v55  ;;  %v240_v15 = vpack.c.bf16 %v205_v11, %v204_v10  ;;  %v175_v17 = vld [vmem:[%s2245_s0 + $0xd8] sm:$0xff]  ;;  %v206_v18 = vld [vmem:[%s2245_s0 + $0x1d0] sm:$0xff]  ;;  %v176_v20 = vld [vmem:[%s2245_s0 + $0xe0] sm:$0xff] }
  0x21   :  { %v207_v19 = vld [vmem:[%s2245_s0 + $0x1d8] sm:$0xff]  ;;  %v177_v21 = vld [vmem:[%s2245_s0 + $0xe8] sm:$0xff]  ;;  %v208_v22 = vld [vmem:[%s2245_s0 + $0x1e0] sm:$0xff]  ;;  %v225_v24 = vpack.c.bf16 %v175_v17, %v174_v16 }
  0x22   :  { %v209_v23 = vld [vmem:[%s2245_s0 + $0x1e8] sm:$0xff]  ;;  %v241_v25 = vpack.c.bf16 %v207_v19, %v206_v18  ;;  %v226_v26 = vpack.c.bf16 %v177_v21, %v176_v20  ;;  %v178_v28 = vld [vmem:[%s2245_s0 + $0xf0] sm:$0xff]  ;;  %v179_v29 = vld [vmem:[%s2245_s0 + $0xf8] sm:$0xff] }
  0x23   :  { %v242_v27 = vpack.c.bf16 %v209_v23, %v208_v22  ;;  %v210_v30 = vld [vmem:[%s2245_s0 + $0x1f0] sm:$0xff]  ;;  %v211_v31 = vld [vmem:[%s2245_s0 + $0x1f8] sm:$0xff]  ;;  %v227_v32 = vpack.c.bf16 %v179_v29, %v178_v28  ;;  %v766_v37 = vld [vmem:[%s2247_s2] sm:$0x3]  ;;  %s1848_s0 = smov [#allocation3]  }
  0x24   :  { %v243_v33 = vpack.c.bf16 %v211_v31, %v210_v30  ;;  %v2101_v39 = vrot.slane %v766_v37, %v833_v36  ;;  %v2103_v40 = vrot.slane %v766_v37, %v901_v38  ;;  %s1356_s2 = sshll.u32 %s1848_s0, 4  ;;  %s1357_s2 = int_to_ptr.vmem [resolvable:$true] %s1356_s2 }
  0x25   :  { %s1824_s4 = scalar_lea.vmem %s1357_s2, 4096  ;;  %p1829_p1 = scmp.lt.s32.totalorder %s1357_s2, %s1357_s2 }
  0x26   :  { %1770 = vmatmul.mubr.msk.bf16.gmra.mrb[16].mxu0 %vm245_vm1, %v221_v0  ;;  %p1825_p0 = scmp.ne.s32.totalorder %s1357_s2, %s1824_s4  ;;  %p1830_p2 = scmp.lt.s32.totalorder %s1824_s4, %s1824_s4 }
  0x27   :  { %1802 = vmatmul.mubr.msk.bf16.gmra.mrb[16].mxu1 %vm245_vm1, %v237_v1  ;;  %1773 = vmatprep.mubr.msk.bf16.mxu0 %vm245_vm1, %v222_v2 }
  0x28   :  { %1805 = vmatprep.mubr.msk.bf16.mxu1 %vm245_vm1, %v238_v3  ;;  %p1831_p3 = por %p1830_p2, %p1829_p1 }
  0x2a   :  { %p1832_p4 = pnand %p1831_p3, %p1825_p0 }
  0x2e   :  { %1774 = vmatmul.mubr.msk.bf16.gmra.mrb[20].mxu0 %vm245_vm1, %v223_v12 }
  0x2f   :  { %1806 = vmatmul.mubr.msk.bf16.gmra.mrb[20].mxu1 %vm245_vm1, %v239_v13  ;;  %1777 = vmatprep.mubr.msk.bf16.mxu0 %vm245_vm1, %v224_v14 }
  0x30   :  { %1809 = vmatprep.mubr.msk.bf16.mxu1 %vm245_vm1, %v240_v15 }
  0x36   :  { %1778 = vmatmul.mubr.msk.bf16.gmra.mrb[24].mxu0 %vm245_vm1, %v225_v24 }
  0x37   :  { %1810 = vmatmul.mubr.msk.bf16.gmra.mrb[24].mxu1 %vm245_vm1, %v241_v25  ;;  %1781 = vmatprep.mubr.msk.bf16.mxu0 %vm245_vm1, %v226_v26 }
  0x38   :  { %1813 = vmatprep.mubr.msk.bf16.mxu1 %vm245_vm1, %v242_v27 }
  0x3e   :  { %1782 = vmatmul.mubr.msk.bf16.gmra.mrb[28].mxu0 %vm245_vm1, %v227_v32 }
  0x3f   :  { %1814 = vmatmul.mubr.msk.bf16.gmra.mrb[28].mxu1 %vm245_vm1, %v243_v33 }
  0xd9   :  { %v1755_v41 = vpop.f32.mrb[0].mxu0 }
  0xda   :  { %v1787_v42 = vpop.f32.mrb[0].mxu1  ;;  %v837_v43 = vmul.f32 %v1755_v41, %v2101_v39  ;;  %v380_v45 = vpop.f32.mrb[1].mxu0 }
  0xdb   :  { %v869_v44 = vmul.f32 %v1787_v42, %v2101_v39  ;;  %v508_v46 = vpop.f32.mrb[1].mxu1  ;;  %v835_v47 = vmul.f32 %v2101_v39, %v380_v45  ;;  %v1756_v49 = vpop.f32.mrb[2].mxu0 }
  0xdc   :  { %v867_v48 = vmul.f32 %v2101_v39, %v508_v46  ;;  %v1788_v50 = vpop.f32.mrb[2].mxu1  ;;  %v905_v51 = vadd.f32 %v2103_v40, %v837_v43  ;;  %v838_v53 = vmul.f32 %v1756_v49, %v2101_v39  ;;  %v383_v55 = vpop.f32.mrb[3].mxu0 }
  0xdd   :  { %v937_v52 = vadd.f32 %v2103_v40, %v869_v44  ;;  %v870_v54 = vmul.f32 %v1788_v50, %v2101_v39  ;;  %v511_v56 = vpop.f32.mrb[3].mxu1  ;;  %v903_v57 = vadd.f32 %v2103_v40, %v835_v47  ;;  %v836_v59 = vmul.f32 %v2101_v39, %v383_v55 }
  0xde   :  { %v935_v58 = vadd.f32 %v2103_v40, %v867_v48  ;;  %v868_v60 = vmul.f32 %v2101_v39, %v511_v56  ;;  %v906_v61 = vadd.f32 %v2103_v40, %v838_v53  ;;  %v969_v1 = vmax.f32 %v905_v51, 0.0 }
  0xdf   :  { %v938_v62 = vadd.f32 %v2103_v40, %v870_v54  ;;  %v904_v63 = vadd.f32 %v2103_v40, %v836_v59  ;;  %v1001_v2 = vmax.f32 %v937_v52, 0.0  ;;  %v967_v5 = vmax.f32 %v903_v57, 0.0 }
  0xe0   :  { %v936_v0 = vadd.f32 %v2103_v40, %v868_v60  ;;  %v970_v3 = vmax.f32 %v906_v61, 0.0  ;;  %v999_v6 = vmax.f32 %v935_v58, 0.0 }
  0xe1   :  { %v1002_v4 = vmax.f32 %v938_v62, 0.0  ;;  %v968_v7 = vmax.f32 %v904_v63, 0.0  ;;  %v1759_v9 = vpop.f32.mrb[4].mxu0 }
  0xe2   :  { %v1000_v8 = vmax.f32 %v936_v0, 0.0  ;;  %v1791_v10 = vpop.f32.mrb[4].mxu1  ;;  %v1535_v11 = vpack.c.bf16 %v970_v3, %v969_v1  ;;  %v841_v13 = vmul.f32 %v1759_v9, %v2101_v39  ;;  %v396_v15 = vpop.f32.mrb[5].mxu0 }
  0xe3   :  { %v1615_v12 = vpack.c.bf16 %v1002_v4, %v1001_v2  ;;  %v873_v14 = vmul.f32 %v1791_v10, %v2101_v39  ;;  %v524_v16 = vpop.f32.mrb[5].mxu1  ;;  %v1530_v17 = vpack.c.bf16 %v968_v7, %v967_v5  ;;  %v839_v19 = vmul.f32 %v2101_v39, %v396_v15  ;;  %v1760_v21 = vpop.f32.mrb[6].mxu0 }
  0xe4   :  { %v1610_v18 = vpack.c.bf16 %v1000_v8, %v999_v6  ;;  %v871_v20 = vmul.f32 %v2101_v39, %v524_v16  ;;  %v1792_v22 = vpop.f32.mrb[6].mxu1  ;;  %1687 = vst [vmem:[#allocation3 + $0x8] sm:$0xff] %v1535_v11   ;;  %v909_v23 = vadd.f32 %v2103_v40, %v841_v13  ;;  %v842_v25 = vmul.f32 %v1760_v21, %v2101_v39  ;;  %v399_v27 = vpop.f32.mrb[7].mxu0 }
  0xe5   :  { %1703 = vst [vmem:[#allocation3 + $0x88] sm:$0xff] %v1615_v12   ;;  %v941_v24 = vadd.f32 %v2103_v40, %v873_v14  ;;  %v874_v26 = vmul.f32 %v1792_v22, %v2101_v39  ;;  %v527_v28 = vpop.f32.mrb[7].mxu1  ;;  %1531 = vst [vmem:[#allocation3] sm:$0xff] %v1530_v17   ;;  %v907_v29 = vadd.f32 %v2103_v40, %v839_v19 }
  0xe6   :  { %1702 = vst [vmem:[#allocation3 + $0x80] sm:$0xff] %v1610_v18   ;;  %v939_v30 = vadd.f32 %v2103_v40, %v871_v20  ;;  %v840_v31 = vmul.f32 %v2101_v39, %v399_v27  ;;  %v872_v32 = vmul.f32 %v2101_v39, %v527_v28  ;;  %v910_v33 = vadd.f32 %v2103_v40, %v842_v25 }
  0xe7   :  { %v942_v34 = vadd.f32 %v2103_v40, %v874_v26  ;;  %v973_v37 = vmax.f32 %v909_v23, 0.0  ;;  %v1005_v38 = vmax.f32 %v941_v24, 0.0  ;;  %v971_v43 = vmax.f32 %v907_v29, 0.0 }
  0xe8   :  { %v908_v35 = vadd.f32 %v2103_v40, %v840_v31  ;;  %v940_v36 = vadd.f32 %v2103_v40, %v872_v32  ;;  %v974_v41 = vmax.f32 %v910_v33, 0.0  ;;  %v1003_v44 = vmax.f32 %v939_v30, 0.0 }
  0xe9   :  { %v1006_v42 = vmax.f32 %v942_v34, 0.0  ;;  %v1763_v47 = vpop.f32.mrb[8].mxu0 }
  0xea   :  { %v972_v45 = vmax.f32 %v908_v35, 0.0  ;;  %v1004_v46 = vmax.f32 %v940_v36, 0.0  ;;  %v1795_v48 = vpop.f32.mrb[8].mxu1  ;;  %v1545_v49 = vpack.c.bf16 %v974_v41, %v973_v37  ;;  %v845_v51 = vmul.f32 %v1763_v47, %v2101_v39  ;;  %v412_v53 = vpop.f32.mrb[9].mxu0 }
  0xeb   :  { %v1625_v50 = vpack.c.bf16 %v1006_v42, %v1005_v38  ;;  %v877_v52 = vmul.f32 %v1795_v48, %v2101_v39  ;;  %v540_v54 = vpop.f32.mrb[9].mxu1  ;;  %v843_v57 = vmul.f32 %v2101_v39, %v412_v53  ;;  %v1764_v59 = vpop.f32.mrb[10].mxu0 }
  0xec   :  { %v1540_v55 = vpack.c.bf16 %v972_v45, %v971_v43  ;;  %v1620_v56 = vpack.c.bf16 %v1004_v46, %v1003_v44  ;;  %v875_v58 = vmul.f32 %v2101_v39, %v540_v54  ;;  %v1796_v60 = vpop.f32.mrb[10].mxu1  ;;  %1689 = vst [vmem:[#allocation3 + $0x18] sm:$0xff] %v1545_v49   ;;  %v913_v61 = vadd.f32 %v2103_v40, %v845_v51  ;;  %v415_v1 = vpop.f32.mrb[11].mxu0 }
  0xed   :  { %1705 = vst [vmem:[#allocation3 + $0x98] sm:$0xff] %v1625_v50   ;;  %v945_v62 = vadd.f32 %v2103_v40, %v877_v52  ;;  %v846_v63 = vmul.f32 %v1764_v59, %v2101_v39  ;;  %v878_v0 = vmul.f32 %v1796_v60, %v2101_v39  ;;  %v543_v2 = vpop.f32.mrb[11].mxu1  ;;  %v911_v3 = vadd.f32 %v2103_v40, %v843_v57 }
  0xee   :  { %1688 = vst [vmem:[#allocation3 + $0x10] sm:$0xff] %v1540_v55   ;;  %1704 = vst [vmem:[#allocation3 + $0x90] sm:$0xff] %v1620_v56   ;;  %v943_v4 = vadd.f32 %v2103_v40, %v875_v58  ;;  %v844_v5 = vmul.f32 %v2101_v39, %v415_v1  ;;  %v876_v6 = vmul.f32 %v2101_v39, %v543_v2  ;;  %v977_v11 = vmax.f32 %v913_v61, 0.0 }
  0xef   :  { %v914_v7 = vadd.f32 %v2103_v40, %v846_v63  ;;  %v946_v8 = vadd.f32 %v2103_v40, %v878_v0  ;;  %v1009_v12 = vmax.f32 %v945_v62, 0.0  ;;  %v975_v15 = vmax.f32 %v911_v3, 0.0 }
  0xf0   :  { %v912_v9 = vadd.f32 %v2103_v40, %v844_v5  ;;  %v944_v10 = vadd.f32 %v2103_v40, %v876_v6  ;;  %v1007_v16 = vmax.f32 %v943_v4, 0.0 }
  0xf1   :  { %v978_v13 = vmax.f32 %v914_v7, 0.0  ;;  %v1010_v14 = vmax.f32 %v946_v8, 0.0  ;;  %v1767_v19 = vpop.f32.mrb[12].mxu0 }
  0xf2   :  { %v976_v17 = vmax.f32 %v912_v9, 0.0  ;;  %v1008_v18 = vmax.f32 %v944_v10, 0.0  ;;  %v1799_v20 = vpop.f32.mrb[12].mxu1  ;;  %v849_v23 = vmul.f32 %v1767_v19, %v2101_v39  ;;  %v428_v25 = vpop.f32.mrb[13].mxu0 }
  0xf3   :  { %v1555_v21 = vpack.c.bf16 %v978_v13, %v977_v11  ;;  %v1635_v22 = vpack.c.bf16 %v1010_v14, %v1009_v12  ;;  %v881_v24 = vmul.f32 %v1799_v20, %v2101_v39  ;;  %v556_v26 = vpop.f32.mrb[13].mxu1  ;;  %v847_v29 = vmul.f32 %v2101_v39, %v428_v25  ;;  %v1768_v31 = vpop.f32.mrb[14].mxu0 }
  0xf4   :  { %v1550_v27 = vpack.c.bf16 %v976_v17, %v975_v15  ;;  %v1630_v28 = vpack.c.bf16 %v1008_v18, %v1007_v16  ;;  %v879_v30 = vmul.f32 %v2101_v39, %v556_v26  ;;  %v1800_v32 = vpop.f32.mrb[14].mxu1  ;;  %v917_v33 = vadd.f32 %v2103_v40, %v849_v23  ;;  %v431_v37 = vpop.f32.mrb[15].mxu0 }
  0xf5   :  { %1691 = vst [vmem:[#allocation3 + $0x28] sm:$0xff] %v1555_v21   ;;  %1707 = vst [vmem:[#allocation3 + $0xa8] sm:$0xff] %v1635_v22   ;;  %v949_v34 = vadd.f32 %v2103_v40, %v881_v24  ;;  %v850_v35 = vmul.f32 %v1768_v31, %v2101_v39  ;;  %v882_v36 = vmul.f32 %v1800_v32, %v2101_v39  ;;  %v559_v38 = vpop.f32.mrb[15].mxu1 }
  0xf6   :  { %1690 = vst [vmem:[#allocation3 + $0x20] sm:$0xff] %v1550_v27   ;;  %1706 = vst [vmem:[#allocation3 + $0xa0] sm:$0xff] %v1630_v28   ;;  %v915_v41 = vadd.f32 %v2103_v40, %v847_v29  ;;  %v947_v42 = vadd.f32 %v2103_v40, %v879_v30  ;;  %v848_v43 = vmul.f32 %v2101_v39, %v431_v37  ;;  %v981_v49 = vmax.f32 %v917_v33, 0.0 }
  0xf7   :  { %v880_v44 = vmul.f32 %v2101_v39, %v559_v38  ;;  %v918_v45 = vadd.f32 %v2103_v40, %v850_v35  ;;  %v950_v46 = vadd.f32 %v2103_v40, %v882_v36  ;;  %v1013_v50 = vmax.f32 %v949_v34, 0.0 }
  0xf8   :  { %v916_v47 = vadd.f32 %v2103_v40, %v848_v43  ;;  %v979_v53 = vmax.f32 %v915_v41, 0.0  ;;  %v1011_v54 = vmax.f32 %v947_v42, 0.0 }
  0xf9   :  { %v948_v48 = vadd.f32 %v2103_v40, %v880_v44  ;;  %v982_v51 = vmax.f32 %v918_v45, 0.0  ;;  %v1014_v52 = vmax.f32 %v950_v46, 0.0  ;;  %v1771_v57 = vpop.f32.mrb[16].mxu0 }
  0xfa   :  { %v980_v55 = vmax.f32 %v916_v47, 0.0  ;;  %v1803_v58 = vpop.f32.mrb[16].mxu1  ;;  %v853_v61 = vmul.f32 %v1771_v57, %v2101_v39  ;;  %v444_v63 = vpop.f32.mrb[17].mxu0 }
  0xfb   :  { %v1012_v56 = vmax.f32 %v948_v48, 0.0  ;;  %v1565_v59 = vpack.c.bf16 %v982_v51, %v981_v49  ;;  %v1645_v60 = vpack.c.bf16 %v1014_v52, %v1013_v50  ;;  %v885_v62 = vmul.f32 %v1803_v58, %v2101_v39  ;;  %v572_v0 = vpop.f32.mrb[17].mxu1  ;;  %v1772_v5 = vpop.f32.mrb[18].mxu0 }
  0xfc   :  { %v1560_v1 = vpack.c.bf16 %v980_v55, %v979_v53  ;;  %v851_v3 = vmul.f32 %v2101_v39, %v444_v63  ;;  %v883_v4 = vmul.f32 %v2101_v39, %v572_v0  ;;  %v1804_v6 = vpop.f32.mrb[18].mxu1  ;;  %v921_v7 = vadd.f32 %v2103_v40, %v853_v61  ;;  %v447_v11 = vpop.f32.mrb[19].mxu0 }
  0xfd   :  { %v1640_v2 = vpack.c.bf16 %v1012_v56, %v1011_v54  ;;  %1693 = vst [vmem:[#allocation3 + $0x38] sm:$0xff] %v1565_v59   ;;  %1709 = vst [vmem:[#allocation3 + $0xb8] sm:$0xff] %v1645_v60   ;;  %v953_v8 = vadd.f32 %v2103_v40, %v885_v62  ;;  %v854_v9 = vmul.f32 %v1772_v5, %v2101_v39  ;;  %v575_v12 = vpop.f32.mrb[19].mxu1 }
  0xfe   :  { %v886_v10 = vmul.f32 %v1804_v6, %v2101_v39  ;;  %1692 = vst [vmem:[#allocation3 + $0x30] sm:$0xff] %v1560_v1   ;;  %v919_v13 = vadd.f32 %v2103_v40, %v851_v3  ;;  %v951_v14 = vadd.f32 %v2103_v40, %v883_v4  ;;  %v852_v15 = vmul.f32 %v2101_v39, %v447_v11 }
  0xff   :  { %1708 = vst [vmem:[#allocation3 + $0xb0] sm:$0xff] %v1640_v2   ;;  %v884_v16 = vmul.f32 %v2101_v39, %v575_v12  ;;  %v922_v17 = vadd.f32 %v2103_v40, %v854_v9  ;;  %v985_v21 = vmax.f32 %v921_v7, 0.0  ;;  %v1017_v22 = vmax.f32 %v953_v8, 0.0 }
 0x100   :  { %v954_v18 = vadd.f32 %v2103_v40, %v886_v10  ;;  %v920_v19 = vadd.f32 %v2103_v40, %v852_v15  ;;  %v983_v25 = vmax.f32 %v919_v13, 0.0  ;;  %v1015_v26 = vmax.f32 %v951_v14, 0.0 }
 0x101   :  { %v952_v20 = vadd.f32 %v2103_v40, %v884_v16  ;;  %v986_v23 = vmax.f32 %v922_v17, 0.0  ;;  %v1775_v29 = vpop.f32.mrb[20].mxu0 }
 0x102   :  { %v1018_v24 = vmax.f32 %v954_v18, 0.0  ;;  %v984_v27 = vmax.f32 %v920_v19, 0.0  ;;  %v1807_v30 = vpop.f32.mrb[20].mxu1  ;;  %v857_v33 = vmul.f32 %v1775_v29, %v2101_v39  ;;  %v460_v35 = vpop.f32.mrb[21].mxu0 }
 0x103   :  { %v1016_v28 = vmax.f32 %v952_v20, 0.0  ;;  %v1575_v31 = vpack.c.bf16 %v986_v23, %v985_v21  ;;  %v889_v34 = vmul.f32 %v1807_v30, %v2101_v39  ;;  %v588_v36 = vpop.f32.mrb[21].mxu1  ;;  %v855_v41 = vmul.f32 %v2101_v39, %v460_v35  ;;  %v1776_v43 = vpop.f32.mrb[22].mxu0 }
 0x104   :  { %v1655_v32 = vpack.c.bf16 %v1018_v24, %v1017_v22  ;;  %v1570_v37 = vpack.c.bf16 %v984_v27, %v983_v25  ;;  %v887_v42 = vmul.f32 %v2101_v39, %v588_v36  ;;  %v1808_v44 = vpop.f32.mrb[22].mxu1  ;;  %v925_v45 = vadd.f32 %v2103_v40, %v857_v33  ;;  %v463_v49 = vpop.f32.mrb[23].mxu0 }
 0x105   :  { %v1650_v38 = vpack.c.bf16 %v1016_v28, %v1015_v26  ;;  %1695 = vst [vmem:[#allocation3 + $0x48] sm:$0xff] %v1575_v31   ;;  %v957_v46 = vadd.f32 %v2103_v40, %v889_v34  ;;  %v858_v47 = vmul.f32 %v1776_v43, %v2101_v39  ;;  %v890_v48 = vmul.f32 %v1808_v44, %v2101_v39  ;;  %v591_v50 = vpop.f32.mrb[23].mxu1 }
 0x106   :  { %1711 = vst [vmem:[#allocation3 + $0xc8] sm:$0xff] %v1655_v32   ;;  %1694 = vst [vmem:[#allocation3 + $0x40] sm:$0xff] %v1570_v37   ;;  %v923_v51 = vadd.f32 %v2103_v40, %v855_v41  ;;  %v955_v52 = vadd.f32 %v2103_v40, %v887_v42  ;;  %v856_v53 = vmul.f32 %v2101_v39, %v463_v49  ;;  %v989_v59 = vmax.f32 %v925_v45, 0.0 }
 0x107   :  { %1710 = vst [vmem:[#allocation3 + $0xc0] sm:$0xff] %v1650_v38   ;;  %v888_v54 = vmul.f32 %v2101_v39, %v591_v50  ;;  %v926_v55 = vadd.f32 %v2103_v40, %v858_v47  ;;  %v958_v56 = vadd.f32 %v2103_v40, %v890_v48  ;;  %v1021_v60 = vmax.f32 %v957_v46, 0.0 }
 0x108   :  { %v924_v57 = vadd.f32 %v2103_v40, %v856_v53  ;;  %v987_v63 = vmax.f32 %v923_v51, 0.0  ;;  %v1019_v0 = vmax.f32 %v955_v52, 0.0 }
 0x109   :  { %v956_v58 = vadd.f32 %v2103_v40, %v888_v54  ;;  %v990_v61 = vmax.f32 %v926_v55, 0.0  ;;  %v1022_v62 = vmax.f32 %v958_v56, 0.0  ;;  %v1779_v3 = vpop.f32.mrb[24].mxu0 }
 0x10a   :  { %v988_v1 = vmax.f32 %v924_v57, 0.0  ;;  %v1811_v4 = vpop.f32.mrb[24].mxu1  ;;  %v861_v7 = vmul.f32 %v1779_v3, %v2101_v39  ;;  %v476_v9 = vpop.f32.mrb[25].mxu0 }
 0x10b   :  { %v1020_v2 = vmax.f32 %v956_v58, 0.0  ;;  %v1585_v5 = vpack.c.bf16 %v990_v61, %v989_v59  ;;  %v1665_v6 = vpack.c.bf16 %v1022_v62, %v1021_v60  ;;  %v893_v8 = vmul.f32 %v1811_v4, %v2101_v39  ;;  %v604_v10 = vpop.f32.mrb[25].mxu1  ;;  %v1780_v15 = vpop.f32.mrb[26].mxu0 }
 0x10c   :  { %v1580_v11 = vpack.c.bf16 %v988_v1, %v987_v63  ;;  %v859_v13 = vmul.f32 %v2101_v39, %v476_v9  ;;  %v891_v14 = vmul.f32 %v2101_v39, %v604_v10  ;;  %v1812_v16 = vpop.f32.mrb[26].mxu1  ;;  %v929_v17 = vadd.f32 %v2103_v40, %v861_v7  ;;  %v479_v21 = vpop.f32.mrb[27].mxu0 }
 0x10d   :  { %v1660_v12 = vpack.c.bf16 %v1020_v2, %v1019_v0  ;;  %1697 = vst [vmem:[#allocation3 + $0x58] sm:$0xff] %v1585_v5   ;;  %1713 = vst [vmem:[#allocation3 + $0xd8] sm:$0xff] %v1665_v6   ;;  %v961_v18 = vadd.f32 %v2103_v40, %v893_v8  ;;  %v862_v19 = vmul.f32 %v1780_v15, %v2101_v39  ;;  %v607_v22 = vpop.f32.mrb[27].mxu1 }
 0x10e   :  { %v894_v20 = vmul.f32 %v1812_v16, %v2101_v39  ;;  %1696 = vst [vmem:[#allocation3 + $0x50] sm:$0xff] %v1580_v11   ;;  %v927_v23 = vadd.f32 %v2103_v40, %v859_v13  ;;  %v959_v24 = vadd.f32 %v2103_v40, %v891_v14  ;;  %v860_v25 = vmul.f32 %v2101_v39, %v479_v21 }
 0x10f   :  { %1712 = vst [vmem:[#allocation3 + $0xd0] sm:$0xff] %v1660_v12   ;;  %v892_v26 = vmul.f32 %v2101_v39, %v607_v22  ;;  %v930_v27 = vadd.f32 %v2103_v40, %v862_v19  ;;  %v993_v31 = vmax.f32 %v929_v17, 0.0  ;;  %v1025_v32 = vmax.f32 %v961_v18, 0.0 }
 0x110   :  { %v962_v28 = vadd.f32 %v2103_v40, %v894_v20  ;;  %v928_v29 = vadd.f32 %v2103_v40, %v860_v25  ;;  %v991_v35 = vmax.f32 %v927_v23, 0.0  ;;  %v1023_v36 = vmax.f32 %v959_v24, 0.0 }
 0x111   :  { %v960_v30 = vadd.f32 %v2103_v40, %v892_v26  ;;  %v994_v33 = vmax.f32 %v930_v27, 0.0  ;;  %v1783_v41 = vpop.f32.mrb[28].mxu0 }
 0x112   :  { %v1026_v34 = vmax.f32 %v962_v28, 0.0  ;;  %v992_v37 = vmax.f32 %v928_v29, 0.0  ;;  %v1815_v42 = vpop.f32.mrb[28].mxu1  ;;  %v865_v45 = vmul.f32 %v1783_v41, %v2101_v39  ;;  %v492_v47 = vpop.f32.mrb[29].mxu0 }
 0x113   :  { %v1024_v38 = vmax.f32 %v960_v30, 0.0  ;;  %v1595_v43 = vpack.c.bf16 %v994_v33, %v993_v31  ;;  %v897_v46 = vmul.f32 %v1815_v42, %v2101_v39  ;;  %v620_v48 = vpop.f32.mrb[29].mxu1  ;;  %v863_v51 = vmul.f32 %v2101_v39, %v492_v47  ;;  %v1784_v53 = vpop.f32.mrb[30].mxu0 }
 0x114   :  { %v1675_v44 = vpack.c.bf16 %v1026_v34, %v1025_v32  ;;  %v1590_v49 = vpack.c.bf16 %v992_v37, %v991_v35  ;;  %v895_v52 = vmul.f32 %v2101_v39, %v620_v48  ;;  %v1816_v54 = vpop.f32.mrb[30].mxu1  ;;  %v933_v55 = vadd.f32 %v2103_v40, %v865_v45  ;;  %v495_v59 = vpop.f32.mrb[31].mxu0 }
 0x115   :  { %v1670_v50 = vpack.c.bf16 %v1024_v38, %v1023_v36  ;;  %1699 = vst [vmem:[#allocation3 + $0x68] sm:$0xff] %v1595_v43   ;;  %v965_v56 = vadd.f32 %v2103_v40, %v897_v46  ;;  %v866_v57 = vmul.f32 %v1784_v53, %v2101_v39  ;;  %v898_v58 = vmul.f32 %v1816_v54, %v2101_v39  ;;  %v623_v60 = vpop.f32.mrb[31].mxu1 }
 0x116   :  { %1715 = vst [vmem:[#allocation3 + $0xe8] sm:$0xff] %v1675_v44   ;;  %1698 = vst [vmem:[#allocation3 + $0x60] sm:$0xff] %v1590_v49   ;;  %v931_v61 = vadd.f32 %v2103_v40, %v863_v51  ;;  %v963_v62 = vadd.f32 %v2103_v40, %v895_v52  ;;  %v864_v63 = vmul.f32 %v2101_v39, %v495_v59  ;;  %v997_v5 = vmax.f32 %v933_v55, 0.0 }
 0x117   :  { %1714 = vst [vmem:[#allocation3 + $0xe0] sm:$0xff] %v1670_v50   ;;  %v896_v0 = vmul.f32 %v2101_v39, %v623_v60  ;;  %v934_v1 = vadd.f32 %v2103_v40, %v866_v57  ;;  %v966_v2 = vadd.f32 %v2103_v40, %v898_v58  ;;  %v1029_v6 = vmax.f32 %v965_v56, 0.0 }
 0x118   :  { %v932_v3 = vadd.f32 %v2103_v40, %v864_v63  ;;  %v995_v9 = vmax.f32 %v931_v61, 0.0  ;;  %v1027_v10 = vmax.f32 %v963_v62, 0.0 }
 0x119   :  { %v964_v4 = vadd.f32 %v2103_v40, %v896_v0  ;;  %v998_v7 = vmax.f32 %v934_v1, 0.0  ;;  %v1030_v8 = vmax.f32 %v966_v2, 0.0 }
 0x11a   :  { %v996_v11 = vmax.f32 %v932_v3, 0.0 }
 0x11b   :  { %v1028_v12 = vmax.f32 %v964_v4, 0.0  ;;  %v1605_v13 = vpack.c.bf16 %v998_v7, %v997_v5  ;;  %v1685_v39 = vpack.c.bf16 %v1030_v8, %v1029_v6 }
 0x11c   :  { %v1600_v14 = vpack.c.bf16 %v996_v11, %v995_v9 }
 0x11d   :  { %v1680_v15 = vpack.c.bf16 %v1028_v12, %v1027_v10  ;;  %1701 = vst [vmem:[#allocation3 + $0x78] sm:$0xff] %v1605_v13   ;;  %1717 = vst [vmem:[#allocation3 + $0xf8] sm:$0xff] %v1685_v39  }
 0x11e   :  { %1700 = vst [vmem:[#allocation3 + $0x70] sm:$0xff] %v1600_v14  }
 0x11f   :  { %1716 = vst [vmem:[#allocation3 + $0xf0] sm:$0xff] %v1680_v15  }
 0x120   :  { %1835 = shalt.err (!%p1832_p4)
}
 0x121   :  { %s1836_s7 = scalar_lea.hbm %s2248_s3, 4096 }
 0x122   :  { %p1837_p5 = scmp.ne.s32.totalorder %s2248_s3, %s1836_s7  ;;  %p1840_p6 = scmp.lt.u32.totalorder %s1836_s7, %s2248_s3 }
 0x124   :  { %p1842_p7 = pnand %p1840_p6, %p1837_p5 }
 0x126   :  { %1845 = shalt.err (!%p1842_p7)
}
 0x127   :  { %s1849_s12 = smov 64   ;;  %s1850_s13 = smov 4  }
 0x128   :  { %1362 = dma.vmem_to_hbm [thread:$0]  %s1357_s2, 4096, %s2248_s3, [#allocation4], %s1849_s12, %s1849_s12, %s1850_s13  }
 0x129   :  { %1846 = dma.done.wait [#allocation4], 4096  }
 0x12a   :  { %1847 = vsyncadd [#allocation4], 4294963200 }
 0x12b   :  { %1366 = vsyncpa [#allocation4], 1 }

</bundles_post_ra>
